<compile_context>
chip_gen: v7x
topology: tpu7x:2x2x1
jax: 0.10.0
libtpu: 0.0.40
codegen_flags: <defaults>
</compile_context>

<pallas_src>
import functools

import jax
import jax.numpy as jnp
import numpy as np
from jax.experimental import pallas as pl
from jax.experimental.pallas import tpu as pltpu


_VMEM_LIMIT_BYTES = 48 * 1024 * 1024   # safe on v7x (64 MiB physical) and below


def _round_up(x, m):
    return (x + m - 1) // m * m


# ---------------------------------------------------------------------------
# Kernel bodies
# ---------------------------------------------------------------------------
def _linear_body(x_ref, w_ref, b_ref, o_ref, acc_ref):
    """One (tm, tn) output tile; grid axis 2 (K) is the innermost reduction.

    acc_ref is either the output ref itself (f32-output path) or a VMEM f32
    scratch (narrow-output path, cast in the epilogue).
    """
    k = pl.program_id(2)

    @pl.when(k == 0)
    def _init():
        if b_ref is None:
            acc_ref[...] = jnp.zeros_like(acc_ref)
        else:
            # Fold the bias into the accumulator init; the epilogue is then a
            # pure cast/store (or disappears entirely on the f32-output path).
            acc_ref[...] = jnp.broadcast_to(
                b_ref[...].astype(jnp.float32), acc_ref.shape)

    acc_ref[...] += jnp.dot(
        x_ref[...], w_ref[...], preferred_element_type=jnp.float32)

    if acc_ref is not o_ref:
        @pl.when(k == pl.num_programs(2) - 1)
        def _finalize():
            o_ref[...] = acc_ref[...].astype(o_ref.dtype)


def _make_linear_kernel(has_bias, acc_into_out):
    if acc_into_out:
        if has_bias:
            def kernel(x_ref, w_ref, b_ref, o_ref):
                _linear_body(x_ref, w_ref, b_ref, o_ref, o_ref)
        else:
            def kernel(x_ref, w_ref, o_ref):
                _linear_body(x_ref, w_ref, None, o_ref, o_ref)
    else:
        if has_bias:
            def kernel(x_ref, w_ref, b_ref, o_ref, acc_ref):
                _linear_body(x_ref, w_ref, b_ref, o_ref, acc_ref)
        else:
            def kernel(x_ref, w_ref, o_ref, acc_ref):
                _linear_body(x_ref, w_ref, None, o_ref, acc_ref)
    return kernel


# ---------------------------------------------------------------------------
# Tile selection (K / N tiles are fixed at module init; M tile per call)
# ---------------------------------------------------------------------------
def _pick_kn_tile(dim, cap):
    """Largest lane-aligned tile <= cap and the padded dim it divides.

    128-aligned for small dims (minimal padding), 256-aligned for big dims so
    the 2x256x256 MXUs of v6e/v7x stay full.
    """
    align = 256 if dim >= 1024 else 128
    padded = _round_up(dim, align)
    if padded <= cap:
        return padded, padded          # single tile, minimal padding
    tile = (cap // align) * align
    return tile, _round_up(dim, tile)


# ---------------------------------------------------------------------------
# Forward
# ---------------------------------------------------------------------------
@functools.partial(jax.jit, static_argnames=("out_feature", "tk", "tn"))
def _inner_product_forward(x, w_p, b_p, *, out_feature, tk, tn):
    B, in_f = x.shape
    Kp, Np = w_p.shape
    assert Kp >= in_f and Kp % tk == 0 and Np % tn == 0

    out_dtype = x.dtype
    compute_dtype = w_p.dtype
    mult = 16 if compute_dtype.itemsize <= 2 else 8   # bf16 sublane packing

    # --- tm: minimize M padding, cap at 512 ---
    if B <= 512:
        tm = _round_up(B, mult)
    else:
        candidates = (512, 448, 384, 320, 256)
        tm = min(candidates, key=lambda t: (_round_up(B, t) - B, -t))
    Bp = _round_up(B, tm)

    # --- guarantee >=2 parallel (M,N) tiles when splittable (v7x megacore) ---
    tn_eff = tn
    if (Bp // tm) * (Np // tn_eff) == 1:
        if tm >= 2 * mult:
            tm = _round_up((B + 1) // 2, mult)
            Bp = _round_up(B, tm)
        elif tn_eff >= 256 and (tn_eff // 2) % 128 == 0:
            tn_eff //= 2

    # --- pad (and cast) x only; W / b were padded + cast once at init ---
    xp = x
    if Bp != B or Kp != in_f:
        xp = jnp.pad(x, ((0, Bp - B), (0, Kp - in_f)))
    if xp.dtype != compute_dtype:
        xp = xp.astype(compute_dtype)

    grid = (Bp // tm, Np // tn_eff, Kp // tk)
    has_bias = b_p is not None
    acc_into_out = (out_dtype == jnp.float32)

    # Streamed bytes reflect the re-read factors of this tiling:
    # x read once per N tile, W read once per M tile.
    n_m, n_n = grid[0], grid[1]
    bytes_accessed = (
        Bp * Kp * compute_dtype.itemsize * n_n
        + Kp * Np * compute_dtype.itemsize * n_m
        + (Np * 4 * n_m if has_bias else 0)
        + Bp * Np * out_dtype.itemsize)
    cost = pl.CostEstimate(
        flops=2 * Bp * Kp * Np, transcendentals=0,
        bytes_accessed=bytes_accessed)

    in_specs = [
        pl.BlockSpec((tm, tk), lambda i, j, k: (i, k)),        # x tile
        pl.BlockSpec((tk, tn_eff), lambda i, j, k: (k, j)),    # W tile
    ]
    args = (xp, w_p)
    if has_bias:
        in_specs.append(pl.BlockSpec((1, tn_eff), lambda i, j, k: (0, j)))
        args = (xp, w_p, b_p)

    scratch_shapes = ([] if acc_into_out
                      else [pltpu.VMEM((tm, tn_eff), jnp.float32)])

    yp = pl.pallas_call(
        _make_linear_kernel(has_bias, acc_into_out),
        out_shape=jax.ShapeDtypeStruct((Bp, Np), out_dtype),
        grid_spec=pltpu.PrefetchScalarGridSpec(
            num_scalar_prefetch=0,
            grid=grid,
            in_specs=in_specs,
            out_specs=pl.BlockSpec((tm, tn_eff), lambda i, j, k: (i, j)),
            scratch_shapes=scratch_shapes,
        ),
        compiler_params=pltpu.CompilerParams(
            dimension_semantics=("parallel", "parallel", "arbitrary"),
            vmem_limit_bytes=_VMEM_LIMIT_BYTES,
        ),
        cost_estimate=cost,
    )(*args)

    if Bp != B or Np != out_feature:
        yp = yp[:B, :out_feature]
    return yp


# ---------------------------------------------------------------------------
# Module wrapper (mirrors the PyTorch InnerProduct / nn.Linear)
# ---------------------------------------------------------------------------
class InnerProduct:
    _TN_CAP = 512

    def __init__(self, in_feature, out_feature, bias=True, *,
                 key=None, compute_dtype=jnp.float32):
        self.in_feature = in_feature
        self.out_feature = out_feature
        self.compute_dtype = np.dtype(compute_dtype)

        if key is None:
            key = jax.random.PRNGKey(0)
        kw, kb = jax.random.split(key)
        bound = 1.0 / float(np.sqrt(in_feature))
        # PyTorch stores weight as (out, in); we keep the transpose (in, out).
        self.weight = jax.random.uniform(
            kw, (in_feature, out_feature), dtype=jnp.float32,
            minval=-bound, maxval=bound)
        self.bias = (
            jax.random.uniform(kb, (out_feature,), dtype=jnp.float32,
                               minval=-bound, maxval=bound)
            if bias else None)

        tk_cap = 2048 if self.compute_dtype.itemsize <= 2 else 1024
        self.tk, Kp = _pick_kn_tile(in_feature, tk_cap)
        self.tn, Np = _pick_kn_tile(out_feature, self._TN_CAP)

        # Pad + cast the parameters ONCE (no per-call HBM copy of W).
        w_p = self.weight
        if Kp != in_feature or Np != out_feature:
            w_p = jnp.pad(w_p, ((0, Kp - in_feature), (0, Np - out_feature)))
        self._w_p = w_p.astype(self.compute_dtype)

        if bias:
            b_p = self.bias
            if Np != out_feature:
                b_p = jnp.pad(b_p, (0, Np - out_feature))
            self._b_p = b_p.reshape(1, Np).astype(jnp.float32)
        else:
            self._b_p = None

    def __call__(self, x, label=None):
        # TODO(synk): `label` is accepted but unused, exactly like the PyTorch forward.
        return _inner_product_forward(
            x, self._w_p, self._b_p,
            out_feature=self.out_feature, tk=self.tk, tn=self.tn)


if __name__ == "__main__":
    key = jax.random.PRNGKey(0)
    k_x, k_p, k_x2 = jax.random.split(key, 3)

    batch, in_feature, out_feature = 8, 32, 16
    x = jax.random.normal(k_x, (batch, in_feature), dtype=jnp.float32)

    # f32 path with bias.
    layer = InnerProduct(in_feature, out_feature, bias=True, key=k_p)
    y = jax.block_until_ready(layer(x))
    y_ref = x @ layer.weight + layer.bias
    assert y.shape == (batch, out_feature)
    assert jnp.allclose(y, y_ref, atol=1e-5, rtol=1e-5), "f32 bias path mismatch"

    # f32 path, no bias (separate kernel variant, no zero-bias DMA).
    layer_nb = InnerProduct(in_feature, out_feature, bias=False, key=k_p)
    y_nb = jax.block_until_ready(layer_nb(x))
    assert jnp.allclose(y_nb, x @ layer_nb.weight, atol=1e-5, rtol=1e-5), \
        "f32 no-bias path mismatch"

    # bf16 MXU path (f32 accumulation), looser tolerance.
    layer_bf16 = InnerProduct(in_feature, out_feature, bias=True, key=k_p,
                              compute_dtype=jnp.bfloat16)
    y_bf = jax.block_until_ready(layer_bf16(x))
    assert jnp.allclose(y_bf, y_ref, atol=5e-2, rtol=5e-2), "bf16 path mismatch"

    # Larger non-aligned shapes: padding, multi-tile grid, megacore split.
    B2, in2, out2 = 200, 384, 300
    x2 = jax.random.normal(k_x2, (B2, in2), dtype=jnp.float32)
    layer2 = InnerProduct(in2, out2, bias=True, key=k_p)
    y2 = jax.block_until_ready(layer2(x2))
    y2_ref = x2 @ layer2.weight + layer2.bias
    assert y2.shape == (B2, out2)
    assert jnp.allclose(y2, y2_ref, atol=2e-3, rtol=2e-3), "large-shape mismatch"

    print("KERNEL_OK")
</pallas_src>

<mosaic_0001>
module attributes {stable_mosaic.version = 11 : i64} {
  func.func @kernel(%arg0: i32, %arg1: i32, %arg2: i32, %arg3: memref<8x128xf32, #tpu.memory_space<vmem>>, %arg4: memref<128x128xf32, #tpu.memory_space<vmem>>, %arg5: memref<1x128xf32, #tpu.memory_space<vmem>>, %arg6: memref<8x128xf32, #tpu.memory_space<vmem>>) attributes {dimension_semantics = [#tpu.dimension_semantics<parallel>, #tpu.dimension_semantics<parallel>, #tpu.dimension_semantics<arbitrary>], iteration_bounds = array<i64: 1, 1, 1>, scalar_prefetch = 0 : i64, scratch_operands = 0 : i64, tpu.core_type = #tpu.core_type<tc>, window_params = [{transform_indices = @transform_0, window_bounds = array<i64: 8, 128>}, {transform_indices = @transform_1, window_bounds = array<i64: 128, 128>}, {transform_indices = @transform_2, window_bounds = array<i64: 1, 128>}, {transform_indices = @transform_3, window_bounds = array<i64: 8, 128>}]} {
    %c0_i32 = arith.constant 0 : i32
    %0 = arith.cmpi eq, %arg2, %c0_i32 : i32
    %1 = arith.extui %0 : i1 to i32
    %c0_i32_0 = arith.constant 0 : i32
    %2 = arith.cmpi ne, %1, %c0_i32_0 : i32
    scf.if %2 {
      %c0_8 = arith.constant 0 : index
      %c0_9 = arith.constant 0 : index
      %9 = vector.load %arg5[%c0_8, %c0_9] : memref<1x128xf32, #tpu.memory_space<vmem>>, vector<1x128xf32>
      %10 = vector.shape_cast %9 : vector<1x128xf32> to vector<1x128xf32>
      %11 = vector.broadcast %10 : vector<1x128xf32> to vector<8x128xf32>
      %c0_10 = arith.constant 0 : index
      %c0_11 = arith.constant 0 : index
      %12 = vector.load %arg6[%c0_10, %c0_11] : memref<8x128xf32, #tpu.memory_space<vmem>>, vector<8x128xf32>
      tpu.vector_store %arg6[%c0_10, %c0_11], %11 {strides = array<i32>} : memref<8x128xf32, #tpu.memory_space<vmem>>, vector<8x128xf32>,
    } else {
    }
    %c0 = arith.constant 0 : index
    %c0_1 = arith.constant 0 : index
    %3 = vector.load %arg6[%c0, %c0_1] : memref<8x128xf32, #tpu.memory_space<vmem>>, vector<8x128xf32>
    %c0_2 = arith.constant 0 : index
    %c0_3 = arith.constant 0 : index
    %4 = vector.load %arg3[%c0_2, %c0_3] : memref<8x128xf32, #tpu.memory_space<vmem>>, vector<8x128xf32>
    %c0_4 = arith.constant 0 : index
    %c0_5 = arith.constant 0 : index
    %5 = vector.load %arg4[%c0_4, %c0_5] : memref<128x128xf32, #tpu.memory_space<vmem>>, vector<128x128xf32>
    %cst = arith.constant dense<0.000000e+00> : vector<8x128xf32>
    %6 = tpu.matmul %4, %5, %cst {dimension_numbers = #tpu.dot_dimension_numbers<[1], [0], [0], [1], [0, 0, 1, 1], [], []>} : vector<8x128xf32>, vector<128x128xf32>, vector<8x128xf32> -> vector<8x128xf32>
    %7 = arith.addf %3, %6 : vector<8x128xf32>
    %c0_6 = arith.constant 0 : index
    %c0_7 = arith.constant 0 : index
    %8 = vector.load %arg6[%c0_6, %c0_7] : memref<8x128xf32, #tpu.memory_space<vmem>>, vector<8x128xf32>
    tpu.vector_store %arg6[%c0_6, %c0_7], %7 {strides = array<i32>} : memref<8x128xf32, #tpu.memory_space<vmem>>, vector<8x128xf32>,
    return
  }
  func.func @transform_0(%arg0: i32, %arg1: i32, %arg2: i32) -> (i32, i32) {
    %c0_i32 = arith.constant 0 : i32
    return %arg0, %arg2 : i32, i32
  }
  func.func @transform_1(%arg0: i32, %arg1: i32, %arg2: i32) -> (i32, i32) {
    %c0_i32 = arith.constant 0 : i32
    return %arg2, %arg1 : i32, i32
  }
  func.func @transform_2(%arg0: i32, %arg1: i32, %arg2: i32) -> (i32, i32) {
    %c0_i32 = arith.constant 0 : i32
    %c0_i32_0 = arith.constant 0 : i32
    return %c0_i32, %arg1 : i32, i32
  }
  func.func @transform_3(%arg0: i32, %arg1: i32, %arg2: i32) -> (i32, i32) {
    %c0_i32 = arith.constant 0 : i32
    return %arg0, %arg1 : i32, i32
  }
}

</mosaic_0001>

<bundles_post_ra>
// kernel: _inner_product_forward.1
= control target key start
LH: loop header
LB: loop body
LE: loop exit
PB: predicated region body
PF: predicated region fallthrough
CT: control target
= control target key end

     0   :  { %8 = vsyncpa [#allocation3], 0  ;;  %s335_s0 = inlined_call_operand.vmem [shape: f32[8,128], index: 0, kind: input, shape index: {}]   ;;  %s336_s1 = inlined_call_operand.hbm [shape: f32[128,128], index: 1, kind: input, shape index: {}]   ;;  %s337_s2 = inlined_call_operand.vmem [shape: f32[1,128], index: 2, kind: input, shape index: {}]   ;;  %s338_s3 = inlined_call_operand.hbm [shape: f32[8,128], index: 3, kind: output, shape index: {}]  }
   0x1   :  { %9 = vsyncpa [#allocation4], 0  ;;  %s278_s12 = smov [#allocation2]   ;;  %s230_s16 = scalar_lea.hbm %s336_s1, 2048 }
   0x2   :  { %s17_s13 = sshll.u32 %s278_s12, 4  ;;  %p231_p0 = scmp.ne.s32.totalorder %s336_s1, %s230_s16  ;;  %s18_s13 = int_to_ptr.vmem [resolvable:$true] %s17_s13 }
   0x3   :  { %p234_p1 = scmp.lt.u32.totalorder %s230_s16, %s336_s1 }
   0x5   :  { %p236_p2 = pnand %p234_p1, %p231_p0 }
   0x7   :  { %239 = shalt.err (!%p236_p2)
}
   0x8   :  { %s240_s21 = scalar_lea.vmem %s18_s13, 2048  ;;  %p245_p4 = scmp.lt.s32.totalorder %s18_s13, %s18_s13 }
   0x9   :  { %p241_p3 = scmp.ne.s32.totalorder %s18_s13, %s240_s21  ;;  %p246_p5 = scmp.lt.s32.totalorder %s240_s21, %s240_s21 }
   0xb   :  { %p247_p6 = por %p246_p5, %p245_p4 }
   0xd   :  { %p248_p7 = pnand %p247_p6, %p241_p3 }
   0xf   :  { %251 = shalt.err (!%p248_p7)
}
  0x10   :  { %s279_s22 = smov 128   ;;  %s280_s23 = smov 8  }
  0x11   :  { %23 = dma.hbm_to_vmem [thread:$0]  %s336_s1, 2048, %s18_s13, [#allocation3], %s279_s22, %s279_s22, %s280_s23  }
  0x12   :  { %274 = dma.done.wait [#allocation3], 2048  }
  0x13   :  { %275 = vsyncadd [#allocation3], 4294965248  ;;  %v281_v0 = vmov 0.0|0.0   ;;  %vm282_vm0 = vmmov 0   ;;  %v283_v1 = vmov 0.0   ;;  %v43_v2 = vld [vmem:[#allocation2] sm:$0xff] }
  0x14   :  { %199 = vmatprep.subr.bf16.mxu0 %v281_v0  ;;  %196 = vmatprep.mubr.msk.f32.mxu0 %vm282_vm0, %v283_v1  ;;  %v44_v3 = vld [vmem:[#allocation2 + $0x8] sm:$0xff]  ;;  %v45_v4 = vld [vmem:[#allocation2 + $0x10] sm:$0xff]  ;;  %v46_v6 = vld [vmem:[#allocation2 + $0x18] sm:$0xff]  ;;  %s284_s29 = smov [#allocation5]  }
  0x15   :  { %v200_v5 = vpack.c.bf16 %v44_v3, %v43_v2  ;;  %v203_v7 = vpack.c.bf16 %v46_v6, %v45_v4  ;;  %v47_v8 = vld [vmem:[#allocation2 + $0x20] sm:$0xff]  ;;  %v48_v9 = vld [vmem:[#allocation2 + $0x28] sm:$0xff]  ;;  %v49_v11 = vld [vmem:[#allocation2 + $0x30] sm:$0xff]  ;;  %s137_s30 = sshll.u32 %s284_s29, 4  ;;  %s138_s30 = int_to_ptr.vmem [resolvable:$true] %s137_s30 }
  0x16   :  { %v206_v10 = vpack.c.bf16 %v48_v9, %v47_v8  ;;  %v50_v12 = vld [vmem:[#allocation2 + $0x38] sm:$0xff]  ;;  %v51_v14 = vld [vmem:[#allocation2 + $0x40] sm:$0xff]  ;;  %v52_v15 = vld [vmem:[#allocation2 + $0x48] sm:$0xff]  ;;  %s252_s4 = scalar_lea.vmem %s138_s30, 128  ;;  %p257_p9 = scmp.lt.s32.totalorder %s138_s30, %s138_s30 }
  0x17   :  { %201 = vmatpush3.bf16.msra.mxu0 %v200_v5  ;;  %v209_v13 = vpack.c.bf16 %v50_v12, %v49_v11  ;;  %v212_v16 = vpack.c.bf16 %v52_v15, %v51_v14  ;;  %v53_v17 = vld [vmem:[#allocation2 + $0x50] sm:$0xff]  ;;  %v54_v18 = vld [vmem:[#allocation2 + $0x58] sm:$0xff]  ;;  %v55_v20 = vld [vmem:[#allocation2 + $0x60] sm:$0xff]  ;;  %p253_p8 = scmp.ne.s32.totalorder %s138_s30, %s252_s4  ;;  %p258_p10 = scmp.lt.s32.totalorder %s252_s4, %s252_s4 }
  0x18   :  { %202 = vmatprep.subr.bf16.mxu0 %v281_v0  ;;  %v215_v19 = vpack.c.bf16 %v54_v18, %v53_v17  ;;  %v56_v21 = vld [vmem:[#allocation2 + $0x68] sm:$0xff]  ;;  %v57_v23 = vld [vmem:[#allocation2 + $0x70] sm:$0xff]  ;;  %v58_v24 = vld [vmem:[#allocation2 + $0x78] sm:$0xff] }
  0x19   :  { %v218_v22 = vpack.c.bf16 %v56_v21, %v55_v20  ;;  %v221_v25 = vpack.c.bf16 %v58_v24, %v57_v23  ;;  %v42_v26 = vld [vmem:[%s335_s0] sm:$0xff]  ;;  %p259_p11 = por %p258_p10, %p257_p9 }
  0x1a   :  { %v146_v27 = vld [vmem:[%s337_s2] ss:$0 sm:$0xff] }
  0x1b   :  { %204 = vmatpush3.bf16.msra.mxu0 %v203_v7  ;;  %p260_p12 = pnand %p259_p11, %p253_p8 }
  0x1c   :  { %205 = vmatprep.subr.bf16.mxu0 %v281_v0 }
  0x1f   :  { %207 = vmatpush3.bf16.msra.mxu0 %v206_v10 }
  0x20   :  { %208 = vmatprep.subr.bf16.mxu0 %v281_v0 }
  0x23   :  { %210 = vmatpush3.bf16.msra.mxu0 %v209_v13 }
  0x24   :  { %211 = vmatprep.subr.bf16.mxu0 %v281_v0 }
  0x27   :  { %213 = vmatpush3.bf16.msra.mxu0 %v212_v16 }
  0x28   :  { %214 = vmatprep.subr.bf16.mxu0 %v281_v0 }
  0x2b   :  { %216 = vmatpush3.bf16.msra.mxu0 %v215_v19 }
  0x2c   :  { %217 = vmatprep.subr.bf16.mxu0 %v281_v0 }
  0x2f   :  { %219 = vmatpush3.bf16.msra.mxu0 %v218_v22 }
  0x30   :  { %220 = vmatprep.subr.bf16.mxu0 %v281_v0 }
  0x33   :  { %222 = vmatpush3.bf16.msra.mxu0 %v221_v25 }
  0x36   :  { %197 = vmatmul.mubr.f32.vlgmr.msra.gmra.mrb[0].mxu0 %v42_v26 }
 0x109   :  { %v125_v28 = vpop.f32.mrb[0].mxu0 }
 0x10a   :  { %v129_v29 = vadd.f32 %v146_v27, %v125_v28  ;;  %v198_v30 = vpop.f32.mrb[1].mxu0 }
 0x10c   :  { %130 = vst [vmem:[#allocation5] sm:$0xff] %v129_v29 }
 0x10d   :  { %263 = shalt.err (!%p260_p12)
}
 0x10e   :  { %s264_s6 = scalar_lea.hbm %s338_s3, 128 }
 0x10f   :  { %p265_p13 = scmp.ne.s32.totalorder %s338_s3, %s264_s6  ;;  %p268_p0 = scmp.lt.u32.totalorder %s264_s6, %s338_s3 }
 0x111   :  { %p270_p1 = pnand %p268_p0, %p265_p13 }
 0x113   :  { %273 = shalt.err (!%p270_p1)
}
 0x114   :  { %140 = dma.vmem_to_hbm [thread:$0]  %s138_s30, 128, %s338_s3, [#allocation4]  }
 0x115   :  { %276 = dma.done.wait [#allocation4], 128  }
 0x116   :  { %277 = vsyncadd [#allocation4], 4294967168 }
 0x117   :  { %144 = vsyncpa [#allocation3], 1 }
 0x118   :  { %145 = vsyncpa [#allocation4], 1 }

</bundles_post_ra>
